<compile_context>
chip_gen: v5e
topology: v5e:2x2
jax: 0.10.0
libtpu: 0.0.40
codegen_flags: <defaults>
</compile_context>

<pallas_src>
import jax
import jax.numpy as jnp
from jax.experimental import pallas as pl
from jax.experimental.pallas import tpu as pltpu

_LANES = 128
_VMEM_CAP = 48 * 1024 * 1024          # leave headroom below v7x's 64 MiB physical VMEM
_X_TILE_TARGET = 4 * 1024 * 1024      # ~4 MiB x tile: good on v5e/v6e, much better on v7x
_K_CHUNK = 512                        # bound f32 elementwise temporaries per reduction step


# ---------------------------------------------------------------------------
# Primary path: out_channels == 1 (TerminationNetwork default).
# VPU multiply + XLU lane reduce; lane-dense (br, 128) output slab.
# ---------------------------------------------------------------------------
def _pick_rowgroups(rows128, k, itemsize, target_bytes=_X_TILE_TARGET):
    """Row-groups (of 128 rows) per grid step, targeting ~4 MiB x tiles.

    Returns either rows128 (single full block) or a multiple of 8 that is
    <= rows128, so the (br, 128) output block always satisfies (8, 128).
    """
    if rows128 <= 8:
        return rows128
    br = target_bytes // (_LANES * k * itemsize)
    br = max(8, (br // 8) * 8)
    br = min(br, 1024)
    br = min(br, (rows128 // 8) * 8)
    return br


def _make_term_gemv_kernel(br, k, ck):
    n_chunks = -(-k // ck)

    def kernel(x_ref, w_ref, o_ref):
        # x_ref: (br*128, K)   w_ref: (1, K)   o_ref: (br, 128)
        x = x_ref[...].reshape(br, _LANES, k)      # sublane split; layout preserving
        w = w_ref[...].reshape(1, 1, k)
        acc = jnp.zeros((br, _LANES), jnp.float32)
        for c in range(n_chunks):                  # static, unrolled chunk loop over K
            lo = c * ck
            hi = min(k, lo + ck)
            xc = x[:, :, lo:hi].astype(jnp.float32)
            wc = w[:, :, lo:hi].astype(jnp.float32)
            acc = acc + jnp.sum(xc * wc, axis=-1)
        o_ref[...] = acc.astype(o_ref.dtype)

    return kernel


def _termination_out1(x2d, weight, m, k):
    rows128 = -(-m // _LANES)
    in_itemsize = jnp.dtype(x2d.dtype).itemsize
    out_itemsize = in_itemsize
    w_itemsize = jnp.dtype(weight.dtype).itemsize

    br = _pick_rowgroups(rows128, k, in_itemsize)
    grid_steps = -(-rows128 // br)
    ck = min(k, _K_CHUNK)
    tile_rows = br * _LANES

    x_tile = tile_rows * k * in_itemsize
    o_tile = tile_rows * out_itemsize
    w_bytes = k * w_itemsize
    # f32 chunk temporaries (upcast + product) + f32 acc + possible in-kernel reshape copy.
    interm = 2 * tile_rows * ck * 4 + tile_rows * 4 + x_tile
    vmem_bytes = min(_VMEM_CAP,
                     max(16 << 20,
                         2 * (x_tile + o_tile + w_bytes) + interm + (2 << 20)))

    cost = pl.CostEstimate(
        flops=2 * m * k,
        transcendentals=0,
        bytes_accessed=m * k * in_itemsize + w_bytes + m * out_itemsize,
    )

    out = pl.pallas_call(
        _make_term_gemv_kernel(br, k, ck),
        out_shape=jax.ShapeDtypeStruct((rows128, _LANES), x2d.dtype),
        grid=(grid_steps,),
        in_specs=[
            pl.BlockSpec((tile_rows, k), lambda i: (i, 0)),   # ragged last block masked
            pl.BlockSpec((1, k), lambda i: (0, 0)),           # weight VMEM-resident
        ],
        out_specs=pl.BlockSpec((br, _LANES), lambda i: (i, 0)),
        compiler_params=pltpu.CompilerParams(
            dimension_semantics=("parallel",),
            vmem_limit_bytes=int(vmem_bytes),
        ),
        cost_estimate=cost,
    )(x2d, weight)

    # Garbage rows from the masked tail block land beyond m and are sliced off here.
    return out.reshape(-1)[:m]


# ---------------------------------------------------------------------------
# General path: out_channels > 1. MXU matmul with a one-time (N,K)->(K,N) transpose.
# ---------------------------------------------------------------------------
def _linear_mxu_kernel(x_ref, w_ref, o_ref):
    # x_ref: (tm, K)   w_ref: (K, N)   o_ref: (tm, N)
    o_ref[...] = jnp.dot(
        x_ref[...], w_ref[...], preferred_element_type=jnp.float32
    ).astype(o_ref.dtype)


def _pick_tm(m, k, itemsize, budget_bytes=8 << 20):
    tm = budget_bytes // (max(k, 1) * itemsize)
    tm = max(8, (tm // 8) * 8)
    tm = min(tm, 1024)
    if tm >= m:
        return m          # single full block (any size is legal when equal to full dim)
    return tm             # multiple of 8, strictly < m; last block is masked


def _termination_general(x2d, weight, m, k, n):
    itemsize = jnp.dtype(x2d.dtype).itemsize
    w_itemsize = jnp.dtype(weight.dtype).itemsize
    tm = _pick_tm(m, k, itemsize)
    grid_steps = -(-m // tm)

    w_t = weight.T        # one-time tiny transpose to MXU-natural (K, N) layout

    x_tile = tm * k * itemsize
    o_tile = tm * n * itemsize
    w_bytes = k * n * w_itemsize
    interm = tm * n * 4   # f32 accumulator before downcast
    vmem_bytes = min(_VMEM_CAP,
                     max(16 << 20,
                         2 * (x_tile + o_tile + w_bytes) + interm + (2 << 20)))

    cost = pl.CostEstimate(
        flops=2 * m * k * n,
        transcendentals=0,
        bytes_accessed=m * k * itemsize + w_bytes + m * n * itemsize,
    )

    return pl.pallas_call(
        _linear_mxu_kernel,
        out_shape=jax.ShapeDtypeStruct((m, n), x2d.dtype),
        grid=(grid_steps,),
        in_specs=[
            pl.BlockSpec((tm, k), lambda i: (i, 0)),
            pl.BlockSpec((k, n), lambda i: (0, 0)),           # weight VMEM-resident
        ],
        out_specs=pl.BlockSpec((tm, n), lambda i: (i, 0)),
        compiler_params=pltpu.CompilerParams(
            dimension_semantics=("parallel",),
            vmem_limit_bytes=int(vmem_bytes),
        ),
        cost_estimate=cost,
    )(x2d, w_t)


# ---------------------------------------------------------------------------
# Public wrapper: y = x @ weight.T  (torch nn.Linear, bias=False)
# ---------------------------------------------------------------------------
def termination_network(x, weight):
    """Forward of TerminationNetwork.

    Args:
      x:      (..., in_channels)
      weight: (out_channels, in_channels) — torch layout.
    Returns:
      (..., out_channels)
    """
    in_channels = x.shape[-1]
    out_channels, wk = weight.shape
    assert wk == in_channels, "weight / in_channels mismatch"

    lead_shape = x.shape[:-1]
    m = 1
    for d in lead_shape:
        m *= d
    if m == 0:
        return jnp.zeros(lead_shape + (out_channels,), x.dtype)

    x2d = x.reshape(m, in_channels)
    if out_channels == 1:
        y = _termination_out1(x2d, weight, m, in_channels)
        return y.reshape(lead_shape + (1,))
    y2d = _termination_general(x2d, weight, m, in_channels, out_channels)
    return y2d.reshape(lead_shape + (out_channels,))


if __name__ == "__main__":
    batch, seq, in_channels = 2, 8, 32
    key = jax.random.PRNGKey(0)
    kx, kw1, kw2 = jax.random.split(key, 3)

    x = jax.random.normal(kx, (batch, seq, in_channels), dtype=jnp.float32)
    bound = 1.0 / (in_channels ** 0.5)

    # Default TerminationNetwork: out_channels = 1 (VPU/XLU lane-dense path).
    w1 = jax.random.uniform(kw1, (1, in_channels), dtype=jnp.float32,
                            minval=-bound, maxval=bound)
    y1 = termination_network(x, w1)
    jax.block_until_ready(y1)
    ref1 = jnp.einsum("bsi,oi->bso", x, w1)
    assert y1.shape == (batch, seq, 1)
    assert jnp.allclose(y1, ref1, atol=1e-5, rtol=1e-5)

    # General out_channels (MXU path, weight transposed once in the wrapper).
    out_channels = 4
    w2 = jax.random.uniform(kw2, (out_channels, in_channels), dtype=jnp.float32,
                            minval=-bound, maxval=bound)
    y2 = termination_network(x, w2)
    jax.block_until_ready(y2)
    ref2 = jnp.einsum("bsi,oi->bso", x, w2)
    assert y2.shape == (batch, seq, out_channels)
    assert jnp.allclose(y2, ref2, atol=1e-5, rtol=1e-5)

    print("KERNEL_OK")
</pallas_src>

<mosaic_0001>
module attributes {stable_mosaic.version = 11 : i64} {
  func.func @kernel(%arg0: i32, %arg1: memref<128x32xf32, #tpu.memory_space<vmem>>, %arg2: memref<1x32xf32, #tpu.memory_space<vmem>>, %arg3: memref<1x128xf32, #tpu.memory_space<vmem>>) attributes {dimension_semantics = [#tpu.dimension_semantics<parallel>], iteration_bounds = array<i64: 1>, scalar_prefetch = 0 : i64, scratch_operands = 0 : i64, tpu.core_type = #tpu.core_type<tc>, window_params = [{transform_indices = @transform_0, window_bounds = array<i64: 128, 32>}, {pipeline_mode = #tpu.pipeline_mode<synchronous>, transform_indices = @transform_1, window_bounds = array<i64: 1, 32>}, {transform_indices = @transform_2, window_bounds = array<i64: 1, 128>}]} {
    %c0 = arith.constant 0 : index
    %c0_0 = arith.constant 0 : index
    %0 = vector.load %arg1[%c0, %c0_0] : memref<128x32xf32, #tpu.memory_space<vmem>>, vector<128x32xf32>
    %1 = vector.shape_cast %0 : vector<128x32xf32> to vector<1x128x32xf32>
    %c0_1 = arith.constant 0 : index
    %c0_2 = arith.constant 0 : index
    %2 = vector.load %arg2[%c0_1, %c0_2] : memref<1x32xf32, #tpu.memory_space<vmem>>, vector<1x32xf32>
    %3 = vector.shape_cast %2 : vector<1x32xf32> to vector<1x1x32xf32>
    %cst = arith.constant 0.000000e+00 : f32
    %4 = vector.broadcast %cst : f32 to vector<1x128xf32>
    %5 = vector.broadcast %3 : vector<1x1x32xf32> to vector<1x128x32xf32>
    %6 = arith.mulf %1, %5 : vector<1x128x32xf32>
    %cst_3 = arith.constant dense<0.000000e+00> : vector<1x128xf32>
    %7 = vector.multi_reduction <add>, %6, %cst_3 [2] : vector<1x128x32xf32> to vector<1x128xf32>
    %8 = arith.addf %4, %7 : vector<1x128xf32>
    %c0_4 = arith.constant 0 : index
    %c0_5 = arith.constant 0 : index
    %9 = vector.load %arg3[%c0_4, %c0_5] : memref<1x128xf32, #tpu.memory_space<vmem>>, vector<1x128xf32>
    tpu.vector_store %arg3[%c0_4, %c0_5], %8 {strides = array<i32>} : memref<1x128xf32, #tpu.memory_space<vmem>>, vector<1x128xf32>,
    return
  }
  func.func @transform_0(%arg0: i32) -> (i32, i32) {
    %c0_i32 = arith.constant 0 : i32
    %c0_i32_0 = arith.constant 0 : i32
    return %arg0, %c0_i32 : i32, i32
  }
  func.func @transform_1(%arg0: i32) -> (i32, i32) {
    %c0_i32 = arith.constant 0 : i32
    %c0_i32_0 = arith.constant 0 : i32
    %c0_i32_1 = arith.constant 0 : i32
    return %c0_i32, %c0_i32_0 : i32, i32
  }
  func.func @transform_2(%arg0: i32) -> (i32, i32) {
    %c0_i32 = arith.constant 0 : i32
    %c0_i32_0 = arith.constant 0 : i32
    return %arg0, %c0_i32 : i32, i32
  }
}

</mosaic_0001>

<bundles_post_ra>
// kernel: tpu_custom_call.1
= control target key start
LH: loop header
LB: loop body
LE: loop exit
PB: predicated region body
PF: predicated region fallthrough
CT: control target
= control target key end

     0   :  { %7 = vsyncpa [#allocation3], 0  ;;  %s389_s0 = inlined_call_operand.hbm [shape: f32[16,32], index: 0, kind: input, shape index: {}]   ;;  %s390_s1 = inlined_call_operand.hbm [shape: f32[1,32], index: 1, kind: input, shape index: {}]   ;;  %s391_s2 = inlined_call_operand.hbm [shape: f32[1,128], index: 2, kind: output, shape index: {}]  }
   0x1   :  { %8 = vsyncpa [#allocation6], 0 }
   0x2   :  { %9 = vsyncpa [#allocation4], 0 }
   0x3   :  { %13 = vsyncadd [#allocation3], 1792  ;;  %s14_s11 = sshll.u32 %s389_s0, 4  ;;  %s326_s12 = smov [#allocation2]   ;;  %s15_s11 = int_to_ptr.hbm [resolvable:$true] %s14_s11 }
   0x4   :  { %s16_s13 = sshll.u32 %s326_s12, 4  ;;  %s28_s16 = sshll.u32 %s390_s1, 4  ;;  %s17_s13 = int_to_ptr.vmem [resolvable:$true] %s16_s13  ;;  %s29_s16 = int_to_ptr.hbm [resolvable:$true] %s28_s16 }
   0x5   :  { %s327_s17 = smov 128   ;;  %s328_s18 = smov 8  }
   0x6   :  { %22 = dma.hbm_to_vmem [thread:$0]  %s15_s11, 256, %s17_s13, [#allocation3], %s327_s17, %s327_s17, %s328_s18  }
   0x7   :  { %s329_s19 = smov [#allocation5]  }
   0x8   :  { %s30_s20 = sshll.u32 %s329_s19, 4  ;;  %s31_s20 = int_to_ptr.vmem [resolvable:$true] %s30_s20 }
   0x9   :  { %33 = dma.hbm_to_vmem [thread:$0]  %s29_s16, 16, %s31_s20, [#allocation6]  }
   0xa   :  { %320 = dma.done.wait [#allocation3], 2048  }
   0xb   :  { %321 = vsyncadd [#allocation3], 4294965248 }
   0xc   :  { %322 = dma.done.wait [#allocation6], 16  }
   0xd   :  { %323 = vsyncadd [#allocation6], 4294967280  ;;  %v42_v0 = vld [vmem:[#allocation2] sm:$0xff]  ;;  %vm78_vm0 = vcmask 261120   ;;  %v44_v2 = vld [vmem:[#allocation2 + $0x10] sm:$0xff]  ;;  %v159_v49 = vlaneseq  ;;  %vm164_vm1 = vcmask 130112  }
   0xe   :  { %v247_v1 = vld [vmem:[#allocation5] ss:$0 sm:$0xff]  ;;  %v43_v7 = vld [vmem:[#allocation2 + $0x8] sm:$0xff]  ;;  %v45_v8 = vld [vmem:[#allocation2 + $0x18] sm:$0xff]  ;;  %vm168_vm2 = vcmask 195712   ;;  %vm172_vm3 = vcmask 261312  }
   0xf   :  { %v46_v3 = vld [vmem:[#allocation2 + $0x20] sm:$0xff]  ;;  %v62_v4 = vmul.f32 %v247_v1, %v42_v0  ;;  %v64_v5 = vmul.f32 %v247_v1, %v44_v2  ;;  %v47_v12 = vld [vmem:[#allocation2 + $0x28] sm:$0xff]  ;;  %v63_v13 = vmul.f32 %v247_v1, %v43_v7  ;;  %v65_v14 = vmul.f32 %v247_v1, %v45_v8  ;;  %v48_v19 = vld [vmem:[#allocation2 + $0x30] sm:$0xff]  ;;  %s330_s0 = smov [#allocation7]   ;;  %s231_s23 = sshll.u32 %s391_s2, 4  ;;  %s232_s23 = int_to_ptr.hbm [resolvable:$true] %s231_s23 }
  0x10   :  { %v66_v6 = vmul.f32 %v247_v1, %v46_v3  ;;  %v67_v15 = vmul.f32 %v247_v1, %v47_v12  ;;  %v49_v20 = vld [vmem:[#allocation2 + $0x38] sm:$0xff]  ;;  %v50_v21 = vld [vmem:[#allocation2 + $0x40] sm:$0xff]  ;;  %v68_v22 = vmul.f32 %v247_v1, %v48_v19  ;;  %v51_v28 = vld [vmem:[#allocation2 + $0x48] sm:$0xff]  ;;  %v368_v53 = vand.u32 127, %v159_v49  ;;  %s229_s1 = sshll.u32 %s330_s0, 4  ;;  %s230_s1 = int_to_ptr.vmem [resolvable:$true] %s229_s1 }
  0x11   :  { %v79_v9 = vsel %vm78_vm0, %v62_v4, 0.0  ;;  %v85_v10 = vsel %vm78_vm0, %v64_v5, 0.0  ;;  %v82_v16 = vsel %vm78_vm0, %v63_v13, 0.0  ;;  %v88_v17 = vsel %vm78_vm0, %v65_v14, 0.0  ;;  %v52_v29 = vld [vmem:[#allocation2 + $0x50] sm:$0xff]  ;;  %v53_v30 = vld [vmem:[#allocation2 + $0x58] sm:$0xff] }
  0x12   :  { %v91_v11 = vsel %vm78_vm0, %v66_v6, 0.0  ;;  %80 = vadd.xlane.f32.xlu0 %v79_v9  ;;  %86 = vadd.xlane.f32.xlu1 %v85_v10  ;;  %v94_v18 = vsel %vm78_vm0, %v67_v15, 0.0  ;;  %v69_v23 = vmul.f32 %v247_v1, %v49_v20  ;;  %v70_v24 = vmul.f32 %v247_v1, %v50_v21  ;;  %v54_v37 = vld [vmem:[#allocation2 + $0x60] sm:$0xff]  ;;  %v55_v38 = vld [vmem:[#allocation2 + $0x68] sm:$0xff]  ;;  %v56_v39 = vld [vmem:[#allocation2 + $0x70] sm:$0xff] }
  0x13   :  { %92 = vadd.xlane.f32.xlu2 %v91_v11  ;;  %v97_v25 = vsel %vm78_vm0, %v68_v22, 0.0  ;;  %v71_v31 = vmul.f32 %v247_v1, %v51_v28  ;;  %v72_v32 = vmul.f32 %v247_v1, %v52_v29  ;;  %v73_v33 = vmul.f32 %v247_v1, %v53_v30  ;;  %v57_v46 = vld [vmem:[#allocation2 + $0x78] sm:$0xff] }
  0x14   :  { %v100_v26 = vsel %vm78_vm0, %v69_v23, 0.0  ;;  %v103_v27 = vsel %vm78_vm0, %v70_v24, 0.0  ;;  %v74_v40 = vmul.f32 %v247_v1, %v54_v37  ;;  %v75_v41 = vmul.f32 %v247_v1, %v55_v38 }
  0x15   :  { %v106_v34 = vsel %vm78_vm0, %v71_v31, 0.0  ;;  %v109_v35 = vsel %vm78_vm0, %v72_v32, 0.0  ;;  %v112_v36 = vsel %vm78_vm0, %v73_v33, 0.0  ;;  %v76_v42 = vmul.f32 %v247_v1, %v56_v39 }
  0x16   :  { %v115_v43 = vsel %vm78_vm0, %v74_v40, 0.0  ;;  %v118_v44 = vsel %vm78_vm0, %v75_v41, 0.0  ;;  %v77_v47 = vmul.f32 %v247_v1, %v57_v46  ;;  %v162_v54 = vadd.s32 4294967288, %v368_v53 }
  0x17   :  { %v121_v45 = vsel %vm78_vm0, %v76_v42, 0.0  ;;  %v166_v55 = vadd.s32 4294967280, %v368_v53  ;;  %v170_v56 = vadd.s32 4294967272, %v368_v53  ;;  %v174_v1 = vadd.s32 4294967264, %v368_v53 }
  0x18   :  { %v124_v48 = vsel %vm78_vm0, %v77_v47, 0.0  ;;  %v178_v3 = vadd.s32 4294967256, %v368_v53  ;;  %v182_v4 = vadd.s32 4294967248, %v368_v53  ;;  %vm176_vm4 = vcmask 326912  }
  0x19   :  { %v186_v10 = vadd.s32 4294967240, %v368_v53  ;;  %vm180_vm5 = vcmask 392512   ;;  %vm184_vm6 = vcmask 458112   ;;  %v190_v14 = vadd.s32 4294967232, %v368_v53 }
  0x1a   :  { %83 = vadd.xlane.f32.xlu0 %v82_v16  ;;  %89 = vadd.xlane.f32.xlu1 %v88_v17  ;;  %v194_v17 = vadd.s32 4294967224, %v368_v53  ;;  %vm188_vm7 = vcmask 523712   ;;  %v198_v21 = vadd.s32 4294967216, %v368_v53  ;;  %vm192_vm8 = vcmask 589312  }
  0x1b   :  { %95 = vadd.xlane.f32.xlu2 %v94_v18  ;;  %vm196_vm9 = vcmask 654912   ;;  %vm200_vm10 = vcmask 720512   ;;  %v206_v30 = vadd.s32 4294967200, %v368_v53  ;;  %v210_v32 = vadd.s32 4294967192, %v368_v53 }
  0x1c   :  { %vm204_vm11 = vcmask 786112   ;;  %vm208_vm12 = vcmask 851712   ;;  %v214_v37 = vadd.s32 4294967184, %v368_v53  ;;  %vm212_vm13 = vcmask 917312  }
  0x1d   :  { %v218_v42 = vadd.s32 4294967176, %v368_v53  ;;  %vm216_vm14 = vcmask 982912   ;;  %vm220_vm15 = vcmask 1048512  }
  0x22   :  { %98 = vadd.xlane.f32.xlu0 %v97_v25  ;;  %101 = vadd.xlane.f32.xlu1 %v100_v26  ;;  %v202_v26 = vadd.s32 4294967208, %v368_v53 }
  0x23   :  { %104 = vadd.xlane.f32.xlu2 %v103_v27 }
  0x2a   :  { %107 = vadd.xlane.f32.xlu0 %v106_v34  ;;  %110 = vadd.xlane.f32.xlu1 %v109_v35 }
  0x2b   :  { %113 = vadd.xlane.f32.xlu2 %v112_v36 }
  0x32   :  { %116 = vadd.xlane.f32.xlu0 %v115_v43  ;;  %119 = vadd.xlane.f32.xlu1 %v118_v44 }
  0x33   :  { %122 = vadd.xlane.f32.xlu2 %v121_v45 }
  0x3a   :  { %125 = vadd.xlane.f32.xlu0 %v124_v48 }
  0x85   :  { %v81_v50 = vpop.xlane.xlu0 %80  ;;  %v87_v51 = vpop.xlane.xlu1 %86 }
  0x86   :  { %v93_v52 = vpop.xlane.xlu2 %92  ;;  %v161_v59 = vperm.slane %v81_v50, %v368_v53  ;;  %v167_v62 = vperm.slane %v87_v51, %v166_v55 }
  0x87   :  { %v175_v6 = vperm.slane %v93_v52, %v174_v1 }
  0x8d   :  { %v84_v57 = vpop.xlane.xlu0 %83  ;;  %v90_v58 = vpop.xlane.xlu1 %89 }
  0x8e   :  { %v163_v60 = vperm.slane %v84_v57, %v162_v54  ;;  %v96_v61 = vpop.xlane.xlu2 %95  ;;  %v171_v0 = vperm.slane %v90_v58, %v170_v56 }
  0x8f   :  { %v179_v9 = vperm.slane %v96_v61, %v178_v3 }
  0x90   :  { %v165_v63 = vsel %vm164_vm1, %v163_v60, %v161_v59 }
  0x91   :  { %v169_v2 = vsel %vm168_vm2, %v167_v62, %v165_v63 }
  0x92   :  { %v173_v5 = vsel %vm172_vm3, %v171_v0, %v169_v2 }
  0x93   :  { %v177_v12 = vsel %vm176_vm4, %v175_v6, %v173_v5 }
  0x94   :  { %v181_v15 = vsel %vm180_vm5, %v179_v9, %v177_v12 }
  0x95   :  { %v99_v7 = vpop.xlane.xlu0 %98  ;;  %v102_v8 = vpop.xlane.xlu1 %101 }
  0x96   :  { %v105_v11 = vpop.xlane.xlu2 %104  ;;  %v183_v13 = vperm.slane %v99_v7, %v182_v4  ;;  %v187_v16 = vperm.slane %v102_v8, %v186_v10 }
  0x97   :  { %v191_v19 = vperm.slane %v105_v11, %v190_v14 }
  0x98   :  { %v185_v18 = vsel %vm184_vm6, %v183_v13, %v181_v15 }
  0x99   :  { %v189_v23 = vsel %vm188_vm7, %v187_v16, %v185_v18 }
  0x9a   :  { %v193_v27 = vsel %vm192_vm8, %v191_v19, %v189_v23 }
  0x9d   :  { %v108_v20 = vpop.xlane.xlu0 %107  ;;  %v111_v22 = vpop.xlane.xlu1 %110 }
  0x9e   :  { %v195_v24 = vperm.slane %v108_v20, %v194_v17  ;;  %v114_v25 = vpop.xlane.xlu2 %113  ;;  %v199_v28 = vperm.slane %v111_v22, %v198_v21 }
  0x9f   :  { %v203_v31 = vperm.slane %v114_v25, %v202_v26 }
  0xa0   :  { %v197_v29 = vsel %vm196_vm9, %v195_v24, %v193_v27 }
  0xa1   :  { %v201_v33 = vsel %vm200_vm10, %v199_v28, %v197_v29 }
  0xa2   :  { %v205_v38 = vsel %vm204_vm11, %v203_v31, %v201_v33 }
  0xa5   :  { %v117_v34 = vpop.xlane.xlu0 %116  ;;  %v120_v35 = vpop.xlane.xlu1 %119 }
  0xa6   :  { %v207_v36 = vperm.slane %v117_v34, %v206_v30  ;;  %v211_v39 = vperm.slane %v120_v35, %v210_v32  ;;  %v123_v40 = vpop.xlane.xlu2 %122 }
  0xa7   :  { %v215_v43 = vperm.slane %v123_v40, %v214_v37 }
  0xa8   :  { %v209_v41 = vsel %vm208_vm12, %v207_v36, %v205_v38 }
  0xa9   :  { %v213_v44 = vsel %vm212_vm13, %v211_v39, %v209_v41 }
  0xaa   :  { %v217_v47 = vsel %vm216_vm14, %v215_v43, %v213_v44 }
  0xad   :  { %v126_v45 = vpop.xlane.xlu0 %125 }
  0xae   :  { %v219_v46 = vperm.slane %v126_v45, %v218_v42 }
  0xb0   :  { %v221_v48 = vsel %vm220_vm15, %v219_v46, %v217_v47 }
  0xb1   :  { %223 = vst [vmem:[#allocation7] sm:$0x1] %v221_v48 }
  0xb2   :  { %234 = dma.vmem_to_hbm [thread:$0]  %s230_s1, 16, %s232_s23, [#allocation4]  }
  0xb3   :  { %324 = dma.done.wait [#allocation4], 16  }
  0xb4   :  { %325 = vsyncadd [#allocation4], 4294967280 }
  0xb5   :  { %239 = vsyncpa [#allocation3], 1 }
  0xb6   :  { %240 = vsyncpa [#allocation6], 1 }
  0xb7   :  { %241 = vsyncpa [#allocation4], 1 }

</bundles_post_ra>
